<compile_context>
chip_gen: v5e
topology: v5e:2x2
jax: 0.10.0
libtpu: 0.0.40
codegen_flags: <defaults>
</compile_context>

<pallas_src>
import jax
import jax.numpy as jnp
from jax.experimental import pallas as pl
from jax.experimental.pallas import tpu as pltpu

_LANE = 128
_SUBLANE = 8
_MAX_TC = 8192                          # lane-tile cap (multiple of 128)
_TARGET_BLOCK_BYTES = 2 * 1024 * 1024   # ~2 MiB x block -> ~8 MiB double-buffered in+out


def _choose_tiles(nc, hw, itemsize):
    """Pick lane-dense tiles that stream x once and fit default scoped VMEM."""
    # Lane (last-dim) tile: use the full HW when it fits (valid even when
    # HW % 128 != 0 via the full-dim exception), otherwise a 128-multiple.
    tc = hw if hw <= _MAX_TC else _MAX_TC
    # Sublane (row) tile: ~2 MiB blocks, multiple of 8, or the whole NC.
    tm = (_TARGET_BLOCK_BYTES // max(tc * itemsize, 1)) // _SUBLANE * _SUBLANE
    tm = max(_SUBLANE, min(1024, tm))
    if nc <= tm:
        tm = nc                         # full-dim block (covers NC % 8 != 0)
    return tm, tc


def _leaf_kernel(p_ref, x_ref, o_ref):
    # p_ref: (tm, 4) per-row params [p1, p2, p3, p4]; x_ref/o_ref: (tm, tc).
    p = p_ref[...].astype(jnp.float32)
    u = x_ref[...].astype(jnp.float32)
    p1 = p[:, 0:1]                      # (tm, 1) -> broadcasts over lanes
    p2 = p[:, 1:2]
    p3 = p[:, 2:3]
    p4 = p[:, 3:4]
    # fmas on the VPU, logistic on the EUP; both have slack vs HBM streaming.
    y = (p1 * u + p2) * jax.nn.sigmoid(p3 * u) + p4
    o_ref[...] = y.astype(o_ref.dtype)


def leaf_forward(x, p1, p2, p3, p4):
    """x: (N, C, H, W); p1..p4: per-channel params of shape (C, 1, 1) or (1,)."""
    N, C, H, W = x.shape
    NC, HW = N * C, H * W
    dtype = x.dtype
    itemsize = jnp.dtype(dtype).itemsize

    tm, tc = _choose_tiles(NC, HW, itemsize)

    x2 = x.reshape(NC, HW)              # contiguous -> free view, no copy

    def expand(p):
        p = jnp.asarray(p, dtype=dtype).reshape(-1)      # (1,) or (C,)
        p = jnp.broadcast_to(p, (C,))
        return jnp.broadcast_to(p[None, :], (N, C)).reshape(NC)

    # Pack p1..p4 as columns of one tiny (NC, 4) buffer.
    params = jnp.stack([expand(p1), expand(p2), expand(p3), expand(p4)], axis=1)

    grid = (pl.cdiv(NC, tm), pl.cdiv(HW, tc))
    x_spec = pl.BlockSpec((tm, tc), lambda i, j: (i, j))
    p_spec = pl.BlockSpec((tm, 4), lambda i, j: (i, 0))   # only re-DMA'd when i changes

    out2 = pl.pallas_call(
        _leaf_kernel,
        out_shape=jax.ShapeDtypeStruct((NC, HW), dtype),
        grid_spec=pltpu.PrefetchScalarGridSpec(
            num_scalar_prefetch=0,
            grid=grid,
            in_specs=[p_spec, x_spec],
            out_specs=x_spec,
        ),
        compiler_params=pltpu.CompilerParams(
            # Both axes independent -> megacore / dual-TC sharding on v7x
            # whenever the grid has more than one step.
            dimension_semantics=("parallel", "parallel"),
        ),
    )(params, x2)

    return out2.reshape(N, C, H, W)


def leaf_reference(x, p1, p2, p3, p4):
    return (p1 * x + p2) * jax.nn.sigmoid(p3 * x) + p4


if __name__ == "__main__":
    key = jax.random.PRNGKey(0)

    # LEAF(size=(C, 1, 1), init_as='CUSTOM') deterministic init:
    #   p1 = ones, p2 = zeros, p3 = ones * 10, p4 = zeros
    N, C, H, W = 2, 4, 16, 16
    x = jax.random.normal(key, (N, C, H, W), dtype=jnp.float32)
    p1 = jnp.ones((C, 1, 1), jnp.float32)
    p2 = jnp.zeros((C, 1, 1), jnp.float32)
    p3 = jnp.ones((C, 1, 1), jnp.float32) * 10.0
    p4 = jnp.zeros((C, 1, 1), jnp.float32)

    y = jax.block_until_ready(leaf_forward(x, p1, p2, p3, p4))
    y_ref = leaf_reference(x, p1[None], p2[None], p3[None], p4[None])
    assert y.shape == (N, C, H, W)
    assert jnp.allclose(y, y_ref, atol=1e-5, rtol=1e-5), "mismatch vs reference"

    # Secondary check: non-(8,128)-aligned NC / HW exercises the full-dim
    # block path (no wrapper padding anywhere).
    N2, C2, H2, W2 = 2, 3, 10, 10
    x2 = jax.random.normal(jax.random.PRNGKey(1), (N2, C2, H2, W2), dtype=jnp.float32)
    q1 = jnp.ones((C2, 1, 1), jnp.float32)
    q2 = jnp.zeros((C2, 1, 1), jnp.float32)
    q3 = jnp.ones((C2, 1, 1), jnp.float32) * 10.0
    q4 = jnp.zeros((C2, 1, 1), jnp.float32)
    y2 = jax.block_until_ready(leaf_forward(x2, q1, q2, q3, q4))
    y2_ref = leaf_reference(x2, q1[None], q2[None], q3[None], q4[None])
    assert jnp.allclose(y2, y2_ref, atol=1e-5, rtol=1e-5), "mismatch vs reference (ragged path)"

    print("KERNEL_OK")
</pallas_src>

<mosaic_0001>
module attributes {stable_mosaic.version = 11 : i64} {
  func.func @_leaf_kernel(%arg0: i32, %arg1: i32, %arg2: memref<8x4xf32, #tpu.memory_space<vmem>>, %arg3: memref<8x256xf32, #tpu.memory_space<vmem>>, %arg4: memref<8x256xf32, #tpu.memory_space<vmem>>) attributes {dimension_semantics = [#tpu.dimension_semantics<parallel>, #tpu.dimension_semantics<parallel>], iteration_bounds = array<i64: 1, 1>, scalar_prefetch = 0 : i64, scratch_operands = 0 : i64, tpu.core_type = #tpu.core_type<tc>, window_params = [{transform_indices = @transform_0, window_bounds = array<i64: 8, 4>}, {transform_indices = @transform_1, window_bounds = array<i64: 8, 256>}, {transform_indices = @transform_2, window_bounds = array<i64: 8, 256>}]} {
    %c0 = arith.constant 0 : index
    %c0_0 = arith.constant 0 : index
    %0 = vector.load %arg2[%c0, %c0_0] : memref<8x4xf32, #tpu.memory_space<vmem>>, vector<8x4xf32>
    %c0_1 = arith.constant 0 : index
    %c0_2 = arith.constant 0 : index
    %1 = vector.load %arg3[%c0_1, %c0_2] : memref<8x256xf32, #tpu.memory_space<vmem>>, vector<8x256xf32>
    %2 = vector.extract_strided_slice %0 {offsets = [0, 0], sizes = [8, 1], strides = [1, 1]} : vector<8x4xf32> to vector<8x1xf32>
    %3 = vector.extract_strided_slice %0 {offsets = [0, 1], sizes = [8, 1], strides = [1, 1]} : vector<8x4xf32> to vector<8x1xf32>
    %4 = vector.extract_strided_slice %0 {offsets = [0, 2], sizes = [8, 1], strides = [1, 1]} : vector<8x4xf32> to vector<8x1xf32>
    %5 = vector.extract_strided_slice %0 {offsets = [0, 3], sizes = [8, 1], strides = [1, 1]} : vector<8x4xf32> to vector<8x1xf32>
    %6 = vector.broadcast %2 : vector<8x1xf32> to vector<8x256xf32>
    %7 = arith.mulf %6, %1 : vector<8x256xf32>
    %8 = vector.broadcast %3 : vector<8x1xf32> to vector<8x256xf32>
    %9 = arith.addf %7, %8 : vector<8x256xf32>
    %10 = vector.broadcast %4 : vector<8x1xf32> to vector<8x256xf32>
    %11 = arith.mulf %10, %1 : vector<8x256xf32>
    %12 = arith.negf %11 : vector<8x256xf32>
    %13 = math.exp %12 : vector<8x256xf32>
    %cst = arith.constant 1.000000e+00 : f32
    %14 = vector.broadcast %cst : f32 to vector<8x256xf32>
    %15 = arith.addf %14, %13 : vector<8x256xf32>
    %16 = arith.divf %14, %15 : vector<8x256xf32>
    %17 = arith.mulf %9, %16 : vector<8x256xf32>
    %18 = vector.broadcast %5 : vector<8x1xf32> to vector<8x256xf32>
    %19 = arith.addf %17, %18 : vector<8x256xf32>
    %c0_3 = arith.constant 0 : index
    %c0_4 = arith.constant 0 : index
    %20 = vector.load %arg4[%c0_3, %c0_4] : memref<8x256xf32, #tpu.memory_space<vmem>>, vector<8x256xf32>
    tpu.vector_store %arg4[%c0_3, %c0_4], %19 {strides = array<i32>} : memref<8x256xf32, #tpu.memory_space<vmem>>, vector<8x256xf32>,
    return
  }
  func.func @transform_0(%arg0: i32, %arg1: i32) -> (i32, i32) {
    %c0_i32 = arith.constant 0 : i32
    %c0_i32_0 = arith.constant 0 : i32
    return %arg0, %c0_i32 : i32, i32
  }
  func.func @transform_1(%arg0: i32, %arg1: i32) -> (i32, i32) {
    %c0_i32 = arith.constant 0 : i32
    return %arg0, %arg1 : i32, i32
  }
  func.func @transform_2(%arg0: i32, %arg1: i32) -> (i32, i32) {
    %c0_i32 = arith.constant 0 : i32
    return %arg0, %arg1 : i32, i32
  }
}

</mosaic_0001>

<bundles_post_ra>
// kernel: tpu_custom_call.1
= control target key start
LH: loop header
LB: loop body
LE: loop exit
PB: predicated region body
PF: predicated region fallthrough
CT: control target
= control target key end

     0   :  { %7 = vsyncpa [#allocation3], 0  ;;  %s216_s0 = inlined_call_operand.vmem [shape: f32[8,4], index: 0, kind: input, shape index: {}]   ;;  %s217_s1 = inlined_call_operand.hbm [shape: f32[8,256], index: 1, kind: input, shape index: {}]   ;;  %s218_s2 = inlined_call_operand.hbm [shape: f32[8,256], index: 2, kind: output, shape index: {}]  }
   0x1   :  { %8 = vsyncpa [#allocation4], 0  ;;  %s16_s11 = sshll.u32 %s217_s1, 4  ;;  %s186_s12 = smov [#allocation2]   ;;  %s17_s11 = int_to_ptr.hbm [resolvable:$true] %s16_s11 }
   0x2   :  { %s18_s13 = sshll.u32 %s186_s12, 4  ;;  %s19_s13 = int_to_ptr.vmem [resolvable:$true] %s18_s13 }
   0x3   :  { %21 = dma.hbm_to_vmem [thread:$0]  %s17_s11, 256, %s19_s13, [#allocation3]  }
   0x4   :  { %182 = dma.done.wait [#allocation3], 256  }
   0x5   :  { %183 = vsyncadd [#allocation3], 4294967040  ;;  %v187_v0 = vmov 2   ;;  %v188_v1 = vmov 1   ;;  %v26_v2 = vld [vmem:[%s216_s0] sm:$0xff]  ;;  %v189_v3 = vmov 0  }
   0x6   :  { %121 = vset.pattern.permute.xlu0 %v187_v0  ;;  %123 = vset.pattern.permute.xlu1 %v188_v1  ;;  %v190_v4 = vmov 3   ;;  %v27_v5 = vld [vmem:[#allocation2] sm:$0xff]  ;;  %v28_v6 = vld [vmem:[#allocation2 + $0x8] sm:$0xff]  ;;  %s191_s0 = smov [#allocation5]   ;;  %s103_s18 = sshll.u32 %s218_s2, 4  ;;  %s104_s18 = int_to_ptr.hbm [resolvable:$true] %s103_s18 }
   0x7   :  { %43 = vperm.xlu0 %121, %v26_v2   ;;  %37 = vperm.xlu1 %123, %v26_v2   ;;  %s101_s1 = sshll.u32 %s191_s0, 4  ;;  %s102_s1 = int_to_ptr.vmem [resolvable:$true] %s101_s1 }
   0xf   :  { %122 = vset.pattern.permute.xlu0 %v189_v3  ;;  %124 = vset.pattern.permute.xlu1 %v190_v4 }
  0x10   :  { %31 = vperm.xlu0 %122, %v26_v2   ;;  %89 = vperm.xlu1 %124, %v26_v2  }
  0x18   :  { %125 = vset.pattern.permute.xlu0 %v190_v4 }
  0x79   :  { %v44_v7 = vpop.permute.xlu0 %43  ;;  %v38_v17 = vpop.permute.xlu1 %37 }
  0x7a   :  { %v46_v8 = vmul.f32 %v44_v7, %v27_v5  ;;  %v47_v9 = vmul.f32 %v44_v7, %v28_v6 }
  0x7c   :  { %v113_v10 = vmul.f32 -1.442695, %v46_v8  ;;  %v114_v11 = vmul.f32 -1.442695, %v47_v9 }
  0x7e   :  { %126 = vpow2.f32 %v113_v10 }
  0x7f   :  { %128 = vpow2.f32 %v114_v11 }
  0x82   :  { %v32_v19 = vpop.permute.xlu0 %31  ;;  %v90_v39 = vpop.permute.xlu1 %89 }
  0x83   :  { %v34_v23 = vmul.f32 %v32_v19, %v27_v5  ;;  %v35_v29 = vmul.f32 %v32_v19, %v28_v6 }
  0x84   :  { %v127_v12 = vpop.eup %126 }
  0x85   :  { %v129_v13 = vpop.eup %128  ;;  %v54_v14 = vadd.f32 1.0, %v127_v12  ;;  %v40_v35 = vadd.f32 %v38_v17, %v34_v23  ;;  %v41_v38 = vadd.f32 %v38_v17, %v35_v29 }
  0x86   :  { %v55_v15 = vadd.f32 1.0, %v129_v13 }
  0x87   :  { %130 = vrcp.f32 %v54_v14  ;;  %v67_v24 = vand.u32 2147483648, %v54_v14  ;;  %v65_v27 = vand.u32 2147483647, %v54_v14  ;;  %vm61_vm2 = vweird.f32 %v54_v14 }
  0x88   :  { %132 = vrcp.f32 %v55_v15  ;;  %v82_v28 = vand.u32 2147483648, %v55_v15  ;;  %v80_v31 = vand.u32 2147483647, %v55_v15  ;;  %vm76_vm4 = vweird.f32 %v55_v15 }
  0x89   :  { %v68_v33 = vor.u32 1.1754944e-38, %v67_v24  ;;  %vm66_vm5 = vcmp.eq.f32.partialorder %v65_v27, 8.507059e+37 }
  0x8a   :  { %v83_v37 = vor.u32 1.1754944e-38, %v82_v28  ;;  %vm81_vm7 = vcmp.eq.f32.partialorder %v80_v31, 8.507059e+37 }
  0x8d   :  { %v131_v16 = vpop.eup %130 }
  0x8e   :  { %v133_v18 = vpop.eup %132  ;;  %v57_v20 = vmul.f32 %v131_v16, %v54_v14  ;;  %vm62_vm0 = vweird.f32 %v131_v16 }
  0x8f   :  { %v72_v21 = vmul.f32 %v133_v18, %v55_v15  ;;  %vm77_vm1 = vweird.f32 %v133_v18  ;;  %vm63_vm3 = vmor %vm61_vm2, %vm62_vm0 }
  0x90   :  { %v58_v22 = vsub.f32 1.0, %v57_v20  ;;  %vm78_vm6 = vmor %vm76_vm4, %vm77_vm1 }
  0x91   :  { %v73_v25 = vsub.f32 1.0, %v72_v21 }
  0x92   :  { %v59_v26 = vmul.f32 %v131_v16, %v58_v22 }
  0x93   :  { %v74_v30 = vmul.f32 %v133_v18, %v73_v25 }
  0x94   :  { %v60_v32 = vadd.f32 %v131_v16, %v59_v26 }
  0x95   :  { %v75_v34 = vadd.f32 %v133_v18, %v74_v30 }
  0x96   :  { %v64_v36 = vsel %vm63_vm3, %v131_v16, %v60_v32 }
  0x97   :  { %v69_v40 = vsel %vm66_vm5, %v68_v33, %v64_v36  ;;  %v79_v41 = vsel %vm78_vm6, %v133_v18, %v75_v34 }
  0x98   :  { %v84_v42 = vsel %vm81_vm7, %v83_v37, %v79_v41  ;;  %v86_v43 = vmul.f32 %v69_v40, %v40_v35 }
  0x99   :  { %v87_v44 = vmul.f32 %v84_v42, %v41_v38 }
  0x9a   :  { %v92_v45 = vadd.f32 %v90_v39, %v86_v43 }
  0x9b   :  { %v93_v46 = vadd.f32 %v90_v39, %v87_v44 }
  0x9c   :  { %94 = vst [vmem:[#allocation5] sm:$0xff] %v92_v45 }
  0x9d   :  { %95 = vst [vmem:[#allocation5 + $0x8] sm:$0xff] %v93_v46 }
  0x9e   :  { %106 = dma.vmem_to_hbm [thread:$0]  %s102_s1, 256, %s104_s18, [#allocation4]  }
  0x9f   :  { %184 = dma.done.wait [#allocation4], 256  }
  0xa0   :  { %185 = vsyncadd [#allocation4], 4294967040 }
  0xa1   :  { %111 = vsyncpa [#allocation3], 1 }
  0xa2   :  { %112 = vsyncpa [#allocation4], 1 }

</bundles_post_ra>
